<compile_context>
chip_gen: v6e
topology: v6e:2x2x1
jax: 0.10.0
libtpu: 0.0.40
codegen_flags: <defaults>
</compile_context>

<pallas_src>
import jax
import jax.numpy as jnp
import numpy as np
from jax.experimental import pallas as pl
from jax.experimental.pallas import tpu as pltpu


def _round_up(v, m):
    return -(-v // m) * m


def _make_encoder_kernel(dims, w_offs, b_offs, Bt, N_ctx, use_reshape_sum):
    """MLP over [Bt*N_ctx, input_size] rows + per-batch mean over N_ctx context rows."""
    n_layers = len(dims) - 1
    r_size = dims[-1]
    inv_n = 1.0 / float(N_ctx)

    def mlp(xy_ref, p_ref):
        h = xy_ref[...]
        for i in range(n_layers):
            d_in, d_out = dims[i], dims[i + 1]
            w = p_ref[w_offs[i]:w_offs[i] + d_in, :d_out]     # lane-aligned weight tile
            b = p_ref[b_offs[i]:b_offs[i] + 1, :d_out]        # bias on sublane-0 row
            h = jnp.dot(h, w, preferred_element_type=jnp.float32) + b
            if i < n_layers - 1:
                h = jnp.maximum(h, 0.0)
        return h  # [Bt*N_ctx, r_size]

    if use_reshape_sum:
        def kernel(xy_ref, p_ref, o_ref):
            vals = mlp(xy_ref, p_ref)
            # N_ctx is a multiple of 8 -> each batch element's context rows fill whole
            # sublane tiles, so the reshape is layout-free and the reduce is a cheap
            # XLU sublane sum (no MXU, no Bt^2 VMEM).
            o_ref[...] = jnp.sum(vals.reshape(Bt, N_ctx, r_size), axis=1) * inv_n
    else:
        def kernel(xy_ref, p_ref, pool_ref, o_ref):
            # pool is precomputed in the wrapper and resident (constant index_map).
            vals = mlp(xy_ref, p_ref)
            o_ref[...] = jnp.dot(pool_ref[...], vals,
                                 preferred_element_type=jnp.float32) * inv_n

    return kernel


def _pack_params(weights, biases, input_size):
    """Pack all layer weights/biases into one lane-padded f32 blob (done ONCE)."""
    n_layers = len(weights)
    dims = [input_size] + [int(w.shape[1]) for w in weights]
    LANES = 128
    wcol = _round_up(max(dims[1:]), LANES)          # 128-lane-wide -> unmasked loads
    w_offs, b_offs = [], []
    rows = 0
    for i in range(n_layers):
        w_offs.append(rows)
        rows += _round_up(dims[i], 8)               # weight block, 8-sublane aligned
        b_offs.append(rows)                         # bias on a sublane-0 boundary
        rows += 8
    buf = np.zeros((rows, wcol), np.float32)
    for i, (w, b) in enumerate(zip(weights, biases)):
        w = np.asarray(w, np.float32)
        b = np.asarray(b, np.float32)
        d_in, d_out = w.shape
        buf[w_offs[i]:w_offs[i] + d_in, :d_out] = w
        buf[b_offs[i], :d_out] = b
    return jnp.asarray(buf), dims, tuple(w_offs), tuple(b_offs)


def make_deterministic_encoder(weights, biases, x_size, y_size, *, bt_target=512):
    """Returns forward(x, y, x_target) -> [B, N_tgt, r_size] (uniform attention)."""
    params, dims, w_offs, b_offs = _pack_params(weights, biases, x_size + y_size)
    input_size = dims[0]
    r_size = dims[-1]

    def forward(x, y, x_target):
        B, N_ctx, _ = x.shape
        N_tgt = x_target.shape[1]

        # ---- batch-tile selection ----
        if B <= 8:
            Bt, B_pad = B, B                         # single step; blocks = full dims
        else:
            # Multiple of 8 (block legality), grid >= 2 (both TCs on v7x), capped at
            # bt_target so per-step VMEM stays small even on v7x's 64 MiB.
            Bt = min(bt_target, max(8, _round_up(pl.cdiv(B, 2), 8)))
            B_pad = _round_up(B, Bt)

        use_reshape_sum = (N_ctx % 8 == 0)
        if not use_reshape_sum and B > 8:
            Bt = min(Bt, 128)                        # fallback pool is O(Bt^2*N_ctx)
            B_pad = _round_up(B, Bt)
        M = Bt * N_ctx

        xy = jnp.concatenate([x, y], axis=-1).astype(jnp.float32)
        if B_pad != B:
            xy = jnp.pad(xy, ((0, B_pad - B), (0, 0), (0, 0)))
        xy2d = xy.reshape(B_pad * N_ctx, input_size)

        kernel = _make_encoder_kernel(dims, w_offs, b_offs, Bt, N_ctx, use_reshape_sum)

        in_specs = [
            pl.BlockSpec((M, input_size), lambda i: (i, 0)),
            # Constant index_map -> params block stays resident across grid steps.
            pl.BlockSpec(params.shape, lambda i: (0, 0)),
        ]
        operands = [xy2d, params]
        if not use_reshape_sum:
            pool = np.equal(np.arange(M)[None, :] // N_ctx,
                            np.arange(Bt)[:, None]).astype(np.float32)
            in_specs.append(pl.BlockSpec((Bt, M), lambda i: (0, 0)))
            operands.append(jnp.asarray(pool))

        rep_pad = pl.pallas_call(
            kernel,
            grid=(B_pad // Bt,),
            in_specs=in_specs,
            out_specs=pl.BlockSpec((Bt, r_size), lambda i: (i, 0)),
            out_shape=jax.ShapeDtypeStruct((B_pad, r_size), jnp.float32),
            compiler_params=pltpu.CompilerParams(
                dimension_semantics=("parallel",)),
        )(*operands)

        rep = rep_pad[:B]
        # Uniform cross-attention == mean over context repeated over targets; the
        # broadcast happens lazily here instead of N_tgt redundant HBM writes in-kernel.
        return jnp.broadcast_to(rep[:, None, :], (B, N_tgt, r_size))

    return jax.jit(forward)


def reference_forward(x, y, x_target, weights, biases):
    """Pure-JAX reference matching the PyTorch forward (uniform attention)."""
    B = x.shape[0]
    r_size = weights[-1].shape[1]
    xy = jnp.concatenate([x, y], axis=-1).astype(jnp.float32)
    h = xy.reshape(-1, xy.shape[-1])
    for w, b in zip(weights[:-1], biases[:-1]):
        h = jax.nn.relu(h @ w + b)
    vals = (h @ weights[-1] + biases[-1]).reshape(B, -1, r_size)
    rep = jnp.mean(vals, axis=1, keepdims=True)
    return jnp.broadcast_to(rep, (B, x_target.shape[1], r_size))


if __name__ == "__main__":
    # module hyper-params
    x_size, y_size = 3, 1
    r_size = 16
    n_hidden = 2
    hidden_size = 32
    # data shapes
    B, N_ctx, N_tgt = 2, 8, 8

    key = jax.random.PRNGKey(0)
    keys = jax.random.split(key, 16)

    # deterministic parameter init for fcs (n_hidden + 1 linear layers)
    dims = [x_size + y_size] + [hidden_size] * n_hidden + [r_size]
    weights, biases = [], []
    for i in range(n_hidden + 1):
        d_in, d_out = dims[i], dims[i + 1]
        weights.append(0.1 * jax.random.normal(keys[3 + 2 * i], (d_in, d_out), jnp.float32))
        biases.append(0.1 * jax.random.normal(keys[4 + 2 * i], (d_out,), jnp.float32))

    # params are packed ONCE here (not per forward call).
    encoder = make_deterministic_encoder(weights, biases, x_size, y_size)

    # small-shape run
    x = jax.random.normal(keys[0], (B, N_ctx, x_size), dtype=jnp.float32)
    y = jax.random.normal(keys[1], (B, N_ctx, y_size), dtype=jnp.float32)
    x_target = jax.random.normal(keys[2], (B, N_tgt, x_size), dtype=jnp.float32)

    out = jax.block_until_ready(encoder(x, y, x_target))
    ref = reference_forward(x, y, x_target, weights, biases)
    np.testing.assert_allclose(np.asarray(out), np.asarray(ref), rtol=1e-5, atol=1e-5)
    assert out.shape == (B, N_tgt, r_size)
    assert out.dtype == jnp.float32

    # larger batch: exercises grid >= 2 (v7x megacore), Bt multiple of 8, and padding.
    B2 = 50
    k2 = jax.random.split(keys[15], 3)
    x2 = jax.random.normal(k2[0], (B2, N_ctx, x_size), dtype=jnp.float32)
    y2 = jax.random.normal(k2[1], (B2, N_ctx, y_size), dtype=jnp.float32)
    xt2 = jax.random.normal(k2[2], (B2, N_tgt, x_size), dtype=jnp.float32)
    out2 = jax.block_until_ready(encoder(x2, y2, xt2))
    ref2 = reference_forward(x2, y2, xt2, weights, biases)
    np.testing.assert_allclose(np.asarray(out2), np.asarray(ref2), rtol=1e-5, atol=1e-5)
    assert out2.shape == (B2, N_tgt, r_size)

    print("KERNEL_OK")
</pallas_src>

<mosaic_0001>
module attributes {stable_mosaic.version = 11 : i64} {
  func.func @kernel(%arg0: i32, %arg1: memref<16x4xf32, #tpu.memory_space<vmem>>, %arg2: memref<96x128xf32, #tpu.memory_space<vmem>>, %arg3: memref<2x16xf32, #tpu.memory_space<vmem>>) attributes {dimension_semantics = [#tpu.dimension_semantics<parallel>], iteration_bounds = array<i64: 1>, scalar_prefetch = 0 : i64, scratch_operands = 0 : i64, tpu.core_type = #tpu.core_type<tc>, window_params = [{transform_indices = @transform_0, window_bounds = array<i64: 16, 4>}, {pipeline_mode = #tpu.pipeline_mode<synchronous>, transform_indices = @transform_1, window_bounds = array<i64: 96, 128>}, {transform_indices = @transform_2, window_bounds = array<i64: 2, 16>}]} {
    %c0 = arith.constant 0 : index
    %c0_0 = arith.constant 0 : index
    %0 = vector.load %arg1[%c0, %c0_0] : memref<16x4xf32, #tpu.memory_space<vmem>>, vector<16x4xf32>
    %c0_1 = arith.constant 0 : index
    %c0_2 = arith.constant 0 : index
    %1 = vector.load %arg2[%c0_1, %c0_2] : memref<96x128xf32, #tpu.memory_space<vmem>>, vector<4x32xf32>
    %c8 = arith.constant 8 : index
    %c0_3 = arith.constant 0 : index
    %2 = vector.load %arg2[%c8, %c0_3] : memref<96x128xf32, #tpu.memory_space<vmem>>, vector<1x32xf32>
    %cst = arith.constant dense<0.000000e+00> : vector<16x32xf32>
    %3 = tpu.matmul %0, %1, %cst {dimension_numbers = #tpu.dot_dimension_numbers<[1], [0], [0], [1], [0, 0, 1, 1], [], []>} : vector<16x4xf32>, vector<4x32xf32>, vector<16x32xf32> -> vector<16x32xf32>
    %4 = vector.broadcast %2 : vector<1x32xf32> to vector<16x32xf32>
    %5 = arith.addf %3, %4 : vector<16x32xf32>
    %cst_4 = arith.constant 0.000000e+00 : f32
    %6 = vector.broadcast %cst_4 : f32 to vector<16x32xf32>
    %7 = arith.maximumf %5, %6 : vector<16x32xf32>
    %c16 = arith.constant 16 : index
    %c0_5 = arith.constant 0 : index
    %8 = vector.load %arg2[%c16, %c0_5] : memref<96x128xf32, #tpu.memory_space<vmem>>, vector<32x32xf32>
    %c48 = arith.constant 48 : index
    %c0_6 = arith.constant 0 : index
    %9 = vector.load %arg2[%c48, %c0_6] : memref<96x128xf32, #tpu.memory_space<vmem>>, vector<1x32xf32>
    %cst_7 = arith.constant dense<0.000000e+00> : vector<16x32xf32>
    %10 = tpu.matmul %7, %8, %cst_7 {dimension_numbers = #tpu.dot_dimension_numbers<[1], [0], [0], [1], [0, 0, 1, 1], [], []>} : vector<16x32xf32>, vector<32x32xf32>, vector<16x32xf32> -> vector<16x32xf32>
    %11 = vector.broadcast %9 : vector<1x32xf32> to vector<16x32xf32>
    %12 = arith.addf %10, %11 : vector<16x32xf32>
    %cst_8 = arith.constant 0.000000e+00 : f32
    %13 = vector.broadcast %cst_8 : f32 to vector<16x32xf32>
    %14 = arith.maximumf %12, %13 : vector<16x32xf32>
    %c56 = arith.constant 56 : index
    %c0_9 = arith.constant 0 : index
    %15 = vector.load %arg2[%c56, %c0_9] : memref<96x128xf32, #tpu.memory_space<vmem>>, vector<32x16xf32>
    %c88 = arith.constant 88 : index
    %c0_10 = arith.constant 0 : index
    %16 = vector.load %arg2[%c88, %c0_10] : memref<96x128xf32, #tpu.memory_space<vmem>>, vector<1x16xf32>
    %cst_11 = arith.constant dense<0.000000e+00> : vector<16x16xf32>
    %17 = tpu.matmul %14, %15, %cst_11 {dimension_numbers = #tpu.dot_dimension_numbers<[1], [0], [0], [1], [0, 0, 1, 1], [], []>} : vector<16x32xf32>, vector<32x16xf32>, vector<16x16xf32> -> vector<16x16xf32>
    %18 = vector.broadcast %16 : vector<1x16xf32> to vector<16x16xf32>
    %19 = arith.addf %17, %18 : vector<16x16xf32>
    %20 = vector.shape_cast %19 : vector<16x16xf32> to vector<2x8x16xf32>
    %cst_12 = arith.constant dense<0.000000e+00> : vector<2x16xf32>
    %21 = vector.multi_reduction <add>, %20, %cst_12 [1] : vector<2x8x16xf32> to vector<2x16xf32>
    %cst_13 = arith.constant 1.250000e-01 : f32
    %22 = vector.broadcast %cst_13 : f32 to vector<2x16xf32>
    %23 = arith.mulf %21, %22 : vector<2x16xf32>
    %c0_14 = arith.constant 0 : index
    %c0_15 = arith.constant 0 : index
    %24 = vector.load %arg3[%c0_14, %c0_15] : memref<2x16xf32, #tpu.memory_space<vmem>>, vector<2x16xf32>
    tpu.vector_store %arg3[%c0_14, %c0_15], %23 {strides = array<i32>} : memref<2x16xf32, #tpu.memory_space<vmem>>, vector<2x16xf32>,
    return
  }
  func.func @transform_0(%arg0: i32) -> (i32, i32) {
    %c0_i32 = arith.constant 0 : i32
    %c0_i32_0 = arith.constant 0 : i32
    return %arg0, %c0_i32 : i32, i32
  }
  func.func @transform_1(%arg0: i32) -> (i32, i32) {
    %c0_i32 = arith.constant 0 : i32
    %c0_i32_0 = arith.constant 0 : i32
    %c0_i32_1 = arith.constant 0 : i32
    return %c0_i32, %c0_i32_0 : i32, i32
  }
  func.func @transform_2(%arg0: i32) -> (i32, i32) {
    %c0_i32 = arith.constant 0 : i32
    %c0_i32_0 = arith.constant 0 : i32
    return %arg0, %c0_i32 : i32, i32
  }
}

</mosaic_0001>

<bundles_post_ra>
// kernel: forward.1
= control target key start
LH: loop header
LB: loop body
LE: loop exit
PB: predicated region body
PF: predicated region fallthrough
CT: control target
= control target key end

     0   :  { %7 = vsyncpa [#allocation3], 0  ;;  %s410_s9 = smov [#allocation2]   ;;  %s444_s0 = inlined_call_operand.vmem [shape: f32[16,4], index: 0, kind: input, shape index: {}]   ;;  %s445_s1 = inlined_call_operand.hbm [shape: f32[96,128], index: 1, kind: input, shape index: {}]   ;;  %s446_s2 = inlined_call_operand.vmem [shape: f32[2,16], index: 2, kind: output, shape index: {}]  }
   0x1   :  { %s15_s10 = sshll.u32 %s410_s9, 4  ;;  %s16_s10 = int_to_ptr.vmem [resolvable:$true] %s15_s10 }
   0x2   :  { %s396_s11 = scalar_lea.vmem %s16_s10, 1536  ;;  %p401_p1 = scmp.lt.s32.totalorder %s16_s10, %s16_s10 }
   0x3   :  { %p397_p0 = scmp.ne.s32.totalorder %s16_s10, %s396_s11  ;;  %p402_p2 = scmp.lt.s32.totalorder %s396_s11, %s396_s11 }
   0x5   :  { %p403_p3 = por %p402_p2, %p401_p1 }
   0x7   :  { %p404_p4 = pnand %p403_p3, %p397_p0 }
   0x9   :  { %407 = shalt.err (!%p404_p4)
}
   0xa   :  { %s411_s12 = smov 128   ;;  %s412_s13 = smov 8  }
   0xb   :  { %21 = dma.hbm_to_vmem [thread:$0]  %s445_s1, 1536, %s16_s10, [#allocation3], %s411_s12, %s411_s12, %s412_s13  }
   0xc   :  { %408 = dma.done.wait [#allocation3], 1536  }
   0xd   :  { %409 = vsyncadd [#allocation3], 4294965760  ;;  %vm40_vm0 = vcmask 1043456   ;;  %vm33_vm1 = vcmask 31744   ;;  %v27_v0 = vld [vmem:[#allocation2] sm:$0xf] }
   0xe   :  { %v25_v1 = vld [vmem:[%s444_s0] sm:$0xff]  ;;  %v26_v2 = vld [vmem:[%s444_s0 + $0x8] sm:$0xff]  ;;  %358 = vmatprep.subr.msk.mxu0 %vm40_vm0, %v27_v0  ;;  %v122_v5 = vld [vmem:[#allocation2 + $0x18] sm:$0xff]  ;;  %vm130_vm2 = vcmask 261120   ;;  %vm304_vm3 = vcmask 130048   ;;  %vm323_vm4 = vcmask 1041409  }
   0xf   :  { %360 = vmatprep.mubr.msk.f32.mxu0 %vm33_vm1, %v25_v1  ;;  %359 = vmatpush3.msk.msra.mxu0 %vm40_vm0, %v27_v0  ;;  %v124_v3 = vld [vmem:[#allocation2 + $0x28] sm:$0xff]  ;;  %v123_v4 = vld [vmem:[#allocation2 + $0x20] sm:$0xff]  ;;  %v121_v6 = vld [vmem:[#allocation2 + $0x10] sm:$0xff]  ;;  %vm326_vm5 = vcmask 123904  }
  0x10   :  { %361 = vmatmul.mubr.msk.f32.vlgmr.msra.gmra.mxu0 %vm33_vm1, %v26_v2  ;;  %363 = vmatprep.subr.mxu1 %v124_v3  ;;  %v333_v7 = vld [vmem:[#allocation2 + $0x8] ss:$0 sm:$0xff]  ;;  %v217_v14 = vld [vmem:[#allocation2 + $0x50] sm:$0xff]  ;;  %v215_v16 = vld [vmem:[#allocation2 + $0x40] sm:$0xff] }
  0x11   :  { %364 = vmatpush3.msra.mxu1 %v124_v3  ;;  %374 = vmatprep.subr.mxu0 %v217_v14  ;;  %v216_v15 = vld [vmem:[#allocation2 + $0x48] sm:$0xff]  ;;  %v214_v17 = vld [vmem:[#allocation2 + $0x38] sm:$0xff]  ;;  %v337_v18 = vld [vmem:[#allocation2 + $0x30] ss:$0 sm:$0xff] }
  0x12   :  { %365 = vmatprep.subr.mxu1 %v123_v4  ;;  %375 = vmatpush3.msra.mxu0 %v217_v14  ;;  %v340_v25 = vld [vmem:[#allocation2 + $0x58] ss:$0 sm:$0xff] }
  0x13   :  { %366 = vmatpush3.msra.mxu1 %v123_v4  ;;  %376 = vmatprep.subr.mxu0 %v216_v15 }
  0x14   :  { %367 = vmatprep.subr.mxu1 %v122_v5  ;;  %377 = vmatpush3.msra.mxu0 %v216_v15 }
  0x15   :  { %368 = vmatpush3.msra.mxu1 %v122_v5  ;;  %378 = vmatprep.subr.mxu0 %v215_v16 }
  0x16   :  { %369 = vmatprep.subr.mxu1 %v121_v6  ;;  %379 = vmatpush3.msra.mxu0 %v215_v16 }
  0x17   :  { %370 = vmatpush3.msra.mxu1 %v121_v6  ;;  %380 = vmatprep.subr.mxu0 %v214_v17 }
  0x18   :  { %381 = vmatpush3.msra.mxu0 %v214_v17 }
  0xd0   :  { %v362_v8 = vpop.f32.mrf.mxu0 }
  0xd1   :  { %v116_v9 = vadd.f32 %v362_v8, %v333_v7 }
  0xd2   :  { %v110_v10 = vpop.f32.mrf.mxu0 }
  0xd3   :  { %v111_v11 = vadd.f32 %v333_v7, %v110_v10  ;;  %v120_v13 = vmax.f32 %v116_v9, 0.0 }
  0xd5   :  { %v119_v12 = vmax.f32 %v111_v11, 0.0 }
  0xd7   :  { %371 = vmatprep.mubr.msk.f32.mxu1 %vm130_vm2, %v119_v12 }
  0xd8   :  { %372 = vmatmul.mubr.msk.f32.vlgmr.msra.gmra.mxu1 %vm130_vm2, %v120_v13 }
 0x198   :  { %v373_v19 = vpop.f32.mrf.mxu1 }
 0x199   :  { %v209_v20 = vadd.f32 %v373_v19, %v337_v18 }
 0x19a   :  { %v203_v21 = vpop.f32.mrf.mxu1 }
 0x19b   :  { %v204_v22 = vadd.f32 %v337_v18, %v203_v21  ;;  %v213_v24 = vmax.f32 %v209_v20, 0.0 }
 0x19d   :  { %v212_v23 = vmax.f32 %v204_v22, 0.0 }
 0x19f   :  { %382 = vmatprep.mubr.msk.f32.mxu0 %vm130_vm2, %v212_v23 }
 0x1a0   :  { %383 = vmatmul.mubr.msk.f32.vlgmr.msra.gmra.mxu0 %vm130_vm2, %v213_v24 }
 0x260   :  { %v384_v26 = vpop.f32.mrf.mxu0 }
 0x261   :  { %v301_v27 = vadd.f32 %v384_v26, %v340_v25 }
 0x262   :  { %v295_v28 = vpop.f32.mrf.mxu0 }
 0x263   :  { %v312_v29 = vsel %vm304_vm3, %v301_v27, 0.0  ;;  %v296_v30 = vadd.f32 %v340_v25, %v295_v28 }
 0x264   :  { %v313_v31 = vrot.slane %v312_v29, 4 }
 0x265   :  { %v305_v32 = vsel %vm304_vm3, %v296_v30, 0.0 }
 0x266   :  { %v314_v33 = vadd.f32 %v313_v31, %v312_v29  ;;  %v306_v34 = vrot.slane %v305_v32, 4 }
 0x268   :  { %v315_v35 = vrot.slane %v314_v33, 2  ;;  %v307_v36 = vadd.f32 %v306_v34, %v305_v32 }
 0x26a   :  { %v316_v37 = vadd.f32 %v315_v35, %v314_v33  ;;  %v308_v38 = vrot.slane %v307_v36, 2 }
 0x26c   :  { %v317_v39 = vrot.slane %v316_v37, 1  ;;  %v309_v40 = vadd.f32 %v308_v38, %v307_v36 }
 0x26e   :  { %v318_v41 = vadd.f32 %v317_v39, %v316_v37  ;;  %v310_v42 = vrot.slane %v309_v40, 1 }
 0x270   :  { %v311_v43 = vadd.f32 %v310_v42, %v309_v40  ;;  %v320_v44 = vmul.f32 0.125, %v318_v41 }
 0x272   :  { %v319_v45 = vmul.f32 0.125, %v311_v43 }
 0x274   :  { %v324_v46 = vsel %vm323_vm4, %v320_v44, %v319_v45 }
 0x275   :  { %327 = vst.msk [vmem:[%s446_s2] sm:$0x3] %vm326_vm5, %v324_v46 }
 0x276   :  { %332 = vsyncpa [#allocation3], 1 }

</bundles_post_ra>
